<compile_context>
chip_gen: v5e
topology: v5e:2x2
jax: 0.10.0
libtpu: 0.0.40
codegen_flags: <defaults>
</compile_context>

<pallas_src>
import functools

import jax
import jax.numpy as jnp
from jax.experimental import pallas as pl
from jax.experimental.pallas import tpu as pltpu


# ----------------------------- in-kernel helpers ----------------------------

def _layer_norm(x, w, b, eps=1e-5):
    # PyTorch nn.LayerNorm: biased variance, eps inside sqrt. f32 math.
    mu = jnp.mean(x, axis=-1, keepdims=True)
    var = jnp.mean((x - mu) ** 2, axis=-1, keepdims=True)
    return (x - mu) * jax.lax.rsqrt(var + eps) * w + b


# ------------------------------ Pallas kernels ------------------------------

def _patch_embed_kernel(p_ref, w_ref, b_ref, o_ref):
    # p: (B*N, K) bf16, w: (K, E) bf16, b: (1, E) f32  ->  o: (B*N, E) f32
    o_ref[...] = (
        jnp.dot(p_ref[...], w_ref[...], preferred_element_type=jnp.float32)
        + b_ref[...]
    )


def _vit_stack_kernel(num_heads, batch,
                      x0_ref, pos_ref,
                      ln1w_ref, ln1b_ref,
                      wq_ref, wk_ref, wv_ref,
                      bq_ref, bk_ref, bv_ref,
                      wo_ref, bo_ref,
                      ln2w_ref, ln2b_ref,
                      w1_ref, b1_ref, w2_ref, b2_ref,
                      clfw_ref, clfb_ref,
                      logits_ref, tok_ref):
    """One encoder layer per grid step; tokens stay resident in VMEM scratch."""
    d = pl.program_id(0)
    bf16 = jnp.bfloat16

    B = batch
    BS, E = tok_ref.shape
    S = BS // B
    H = num_heads
    hd = E // H
    BH = B * H
    scale = 1.0 / float(hd) ** 0.5

    # Layer 0: initialize resident token buffer (fused positional-embedding add).
    @pl.when(d == 0)
    def _():
        tok_ref[...] = (x0_ref[...] + pos_ref[...]).reshape(BS, E)

    x = tok_ref[...]                                        # (B*S, E) f32

    # ---------------- ln1 + multi-head self-attention + residual -------------
    h1 = _layer_norm(x, ln1w_ref[0], ln1b_ref[0])
    # Head-batched projections on pre-split per-head weights (H, E, hd):
    # no 8-lane slicing of a packed qkv, no per-head matmul loop.
    h1h = jnp.broadcast_to(h1.astype(bf16)[None], (H, BS, E))

    def head_proj(w_ref_, b_ref_):
        y = jnp.einsum('hre,hed->hrd', h1h, w_ref_[0],
                       preferred_element_type=jnp.float32) + b_ref_[0]
        # (H, B*S, hd) -> (H*B, S, hd): each (head, batch) pair becomes its own
        # leading batch index for the attention einsums (leading-dim reshape).
        return y.reshape(BH, S, hd)

    q = head_proj(wq_ref, bq_ref)
    k = head_proj(wk_ref, bk_ref)
    v = head_proj(wv_ref, bv_ref)

    s = jnp.einsum('nqd,nkd->nqk', q.astype(bf16), k.astype(bf16),
                   preferred_element_type=jnp.float32) * scale     # (H*B, S, S)
    s = s - jnp.max(s, axis=-1, keepdims=True)
    p = jnp.exp(s)
    l = jnp.sum(p, axis=-1, keepdims=True)
    o = jnp.einsum('nqk,nkd->nqd', p.astype(bf16), v.astype(bf16),
                   preferred_element_type=jnp.float32)             # (H*B, S, hd)
    # Deferred softmax normalization on the (S, hd) context; EUP reciprocal.
    o = o * pl.reciprocal(l, approx=True)

    # Per-head output projection + sum over heads (replaces concat + (E,E) dot).
    o = o.reshape(H, BS, hd)
    y = jnp.einsum('hrd,hde->hre', o.astype(bf16), wo_ref[0],
                   preferred_element_type=jnp.float32)             # (H, B*S, E)
    attn = y[0]
    for hh in range(1, H):              # H-1 vector adds over an outer dim only
        attn = attn + y[hh]
    x = x + attn + bo_ref[0]

    # ------------------------- ln2 + MLP + residual --------------------------
    h2 = _layer_norm(x, ln2w_ref[0], ln2b_ref[0])
    m = (jnp.dot(h2.astype(bf16), w1_ref[0], preferred_element_type=jnp.float32)
         + b1_ref[0])
    m = jax.nn.gelu(m, approximate=False)               # exact erf GELU (f32)
    x = x + (jnp.dot(m.astype(bf16), w2_ref[0],
                     preferred_element_type=jnp.float32) + b2_ref[0])

    tok_ref[...] = x

    # Last layer: fused mean-pool + classifier head (tokens never go to HBM).
    @pl.when(d == pl.num_programs(0) - 1)
    def _():
        pooled = jnp.mean(x.reshape(B, S, E), axis=1)              # (B, E)
        logits_ref[...] = (
            jnp.dot(pooled.astype(bf16), clfw_ref[...],
                    preferred_element_type=jnp.float32)
            + clfb_ref[...]
        )


# ------------------------- one-time parameter prep ---------------------------

def prepare_params(params, cfg):
    """Hoists all transposes / per-head splits / depth stacking / bf16 casts out
    of the per-forward path."""
    E, H, mlp, ps, C = (cfg['hidden'], cfg['heads'], cfg['mlp'], cfg['ps'],
                        cfg['classes'])
    hd = E // H
    K = 3 * ps * ps
    bf16 = jnp.bfloat16
    blocks = params['blocks']

    def stack(fn, dtype=jnp.float32):
        return jnp.stack([fn(b) for b in blocks]).astype(dtype)

    def per_head(w):                   # (E_out=E, E_in=E) -> (H, E_in, hd)
        return w.T.reshape(E, H, hd).transpose(1, 0, 2)

    return {
        'conv_wt': params['conv_w'].reshape(E, K).T.astype(bf16),     # (K, E)
        'conv_b': params['conv_b'].reshape(1, E),
        'pos': params['pos'],                                         # (1, N, E)
        'clf_wt': params['clf_w'].T.astype(bf16),                     # (E, C)
        'clf_b': params['clf_b'].reshape(1, C),
        'ln1_w': stack(lambda b: b['ln1_w'].reshape(1, E)),           # (D, 1, E)
        'ln1_b': stack(lambda b: b['ln1_b'].reshape(1, E)),
        'wq': stack(lambda b: per_head(b['in_w'][:E]), bf16),         # (D, H, E, hd)
        'wk': stack(lambda b: per_head(b['in_w'][E:2 * E]), bf16),
        'wv': stack(lambda b: per_head(b['in_w'][2 * E:]), bf16),
        'bq': stack(lambda b: b['in_b'][:E].reshape(H, 1, hd)),       # (D, H, 1, hd)
        'bk': stack(lambda b: b['in_b'][E:2 * E].reshape(H, 1, hd)),
        'bv': stack(lambda b: b['in_b'][2 * E:].reshape(H, 1, hd)),
        'wo': stack(lambda b: b['out_w'].T.reshape(H, hd, E), bf16),  # (D, H, hd, E)
        'bo': stack(lambda b: b['out_b'].reshape(1, E)),              # (D, 1, E)
        'ln2_w': stack(lambda b: b['ln2_w'].reshape(1, E)),
        'ln2_b': stack(lambda b: b['ln2_b'].reshape(1, E)),
        'w1': stack(lambda b: b['w1'].T, bf16),                       # (D, E, mlp)
        'b1': stack(lambda b: b['b1'].reshape(1, mlp)),               # (D, 1, mlp)
        'w2': stack(lambda b: b['w2'].T, bf16),                       # (D, mlp, E)
        'b2': stack(lambda b: b['b2'].reshape(1, E)),                 # (D, 1, E)
    }


# ------------------------------ forward wrapper -------------------------------

def vit_forward_pallas(x, prepped, cfg):
    B = x.shape[0]
    ps, E, H, C = cfg['ps'], cfg['hidden'], cfg['heads'], cfg['classes']
    depth, mlp = cfg['depth'], cfg['mlp']
    hd = E // H
    Hp, Wp = x.shape[2] // ps, x.shape[3] // ps
    N = Hp * Wp
    K = 3 * ps * ps

    # ---- patch embedding: one lane-dense (B*N, K) x (K, E) matmul -----------
    patches = (x.reshape(B, 3, Hp, ps, Wp, ps)
                 .transpose(0, 2, 4, 1, 3, 5)
                 .reshape(B * N, K)).astype(jnp.bfloat16)
    emb = pl.pallas_call(
        _patch_embed_kernel,
        grid=(1,),
        in_specs=[pl.BlockSpec((B * N, K), lambda i: (0, 0)),
                  pl.BlockSpec((K, E), lambda i: (0, 0)),
                  pl.BlockSpec((1, E), lambda i: (0, 0))],
        out_specs=pl.BlockSpec((B * N, E), lambda i: (0, 0)),
        out_shape=jax.ShapeDtypeStruct((B * N, E), jnp.float32),
    )(patches, prepped['conv_wt'], prepped['conv_b'])

    # Faithfully reproduce PyTorch's raw `reshape(B, H*W, hidden)` on the NCHW
    # conv output (channel/spatial interleave; it is NOT a transpose).
    conv_nchw = emb.reshape(B, Hp, Wp, E).transpose(0, 3, 1, 2)      # (B, E, Hp, Wp)
    tokens0 = conv_nchw.reshape(B, N, E)

    def per_layer(*dims):
        n = len(dims)
        return pl.BlockSpec((1,) + tuple(dims), lambda d, _n=n: (d,) + (0,) * _n)

    def const(*dims):
        n = len(dims)
        return pl.BlockSpec(tuple(dims), lambda d, _n=n: (0,) * _n)

    # ---- fused transformer stack + pooling + classifier head -----------------
    logits = pl.pallas_call(
        functools.partial(_vit_stack_kernel, H, B),
        grid=(depth,),
        in_specs=[
            const(B, N, E),                                    # tokens (pre pos-add)
            const(1, N, E),                                    # positional embedding
            per_layer(1, E), per_layer(1, E),                  # ln1 w, b
            per_layer(H, E, hd), per_layer(H, E, hd), per_layer(H, E, hd),  # wq wk wv
            per_layer(H, 1, hd), per_layer(H, 1, hd), per_layer(H, 1, hd),  # bq bk bv
            per_layer(H, hd, E), per_layer(1, E),              # out-proj w, b
            per_layer(1, E), per_layer(1, E),                  # ln2 w, b
            per_layer(E, mlp), per_layer(1, mlp),              # mlp fc1 w, b
            per_layer(mlp, E), per_layer(1, E),                # mlp fc2 w, b
            const(E, C), const(1, C),                          # classifier w, b
        ],
        out_specs=pl.BlockSpec((B, C), lambda d: (0, 0)),
        out_shape=jax.ShapeDtypeStruct((B, C), jnp.float32),
        scratch_shapes=[pltpu.VMEM((B * N, E), jnp.float32)],  # resident tokens
        compiler_params=pltpu.CompilerParams(
            # Layers are sequentially dependent -> single "arbitrary" grid axis.
            # VMEM at this config is tiny; at real ViT sizes tile MLP/QKV over a
            # K axis and single-buffer constant-index weight specs for v7x.
            dimension_semantics=("arbitrary",)),
    )(tokens0, prepped['pos'],
      prepped['ln1_w'], prepped['ln1_b'],
      prepped['wq'], prepped['wk'], prepped['wv'],
      prepped['bq'], prepped['bk'], prepped['bv'],
      prepped['wo'], prepped['bo'],
      prepped['ln2_w'], prepped['ln2_b'],
      prepped['w1'], prepped['b1'],
      prepped['w2'], prepped['b2'],
      prepped['clf_wt'], prepped['clf_b'])
    return logits


# --------------------------- pure-JAX reference ------------------------------

def vit_forward_ref(x, params, cfg):
    B = x.shape[0]
    ps, E, heads, C = cfg['ps'], cfg['hidden'], cfg['heads'], cfg['classes']
    Hp, Wp = x.shape[2] // ps, x.shape[3] // ps
    N = Hp * Wp
    K = 3 * ps * ps
    head_dim = E // heads

    patches = (x.reshape(B, 3, Hp, ps, Wp, ps)
                 .transpose(0, 2, 4, 1, 3, 5)
                 .reshape(B, N, K))
    emb = patches @ params['conv_w'].reshape(E, K).T + params['conv_b']
    conv_nchw = emb.reshape(B, Hp, Wp, E).transpose(0, 3, 1, 2)
    t = conv_nchw.reshape(B, N, E) + params['pos']

    for blk in params['blocks']:
        h = _layer_norm(t, blk['ln1_w'], blk['ln1_b'])
        qkv = h @ blk['in_w'].T + blk['in_b']
        q, k, v = qkv[..., :E], qkv[..., E:2 * E], qkv[..., 2 * E:]

        def split(a):
            return a.reshape(B, N, heads, head_dim).transpose(0, 2, 1, 3)

        qh, kh, vh = split(q), split(k), split(v)
        s = jnp.einsum('bhqd,bhkd->bhqk', qh, kh) / (head_dim ** 0.5)
        p = jax.nn.softmax(s, axis=-1)
        o = jnp.einsum('bhqk,bhkd->bhqd', p, vh)
        o = o.transpose(0, 2, 1, 3).reshape(B, N, E)
        o = o @ blk['out_w'].T + blk['out_b']
        t = t + o

        h2 = _layer_norm(t, blk['ln2_w'], blk['ln2_b'])
        m = h2 @ blk['w1'].T + blk['b1']
        m = jax.nn.gelu(m, approximate=False)
        m = m @ blk['w2'].T + blk['b2']
        t = t + m

    pooled = t.mean(axis=1)
    return pooled @ params['clf_w'].T + params['clf_b']


# ------------------------------ params ---------------------------------------

def init_params(key, cfg):
    E, mlp, ps, depth, C = (cfg['hidden'], cfg['mlp'], cfg['ps'],
                            cfg['depth'], cfg['classes'])
    H, W = cfg['image']
    N = (H // ps) * (W // ps)
    keys = iter(jax.random.split(key, 5 + 8 * depth))

    def nrm(shape, s=0.02):
        return s * jax.random.normal(next(keys), shape, jnp.float32)

    params = {
        'conv_w': nrm((E, 3, ps, ps)),
        'conv_b': nrm((E,)),
        'pos': jax.random.normal(next(keys), (1, N, E), jnp.float32),  # init.normal_
        'clf_w': nrm((C, E)),
        'clf_b': nrm((C,)),
        'blocks': [],
    }
    for _ in range(depth):
        params['blocks'].append({
            'ln1_w': jnp.ones((E,), jnp.float32),
            'ln1_b': jnp.zeros((E,), jnp.float32),
            'in_w': nrm((3 * E, E)),
            'in_b': nrm((3 * E,)),
            'out_w': nrm((E, E)),
            'out_b': nrm((E,)),
            'ln2_w': jnp.ones((E,), jnp.float32),
            'ln2_b': jnp.zeros((E,), jnp.float32),
            'w1': nrm((mlp, E)),
            'b1': nrm((mlp,)),
            'w2': nrm((E, mlp)),
            'b2': nrm((E,)),
        })
    return params


# -------------------------------- main ----------------------------------------

if __name__ == "__main__":
    cfg = dict(image=(16, 16), hidden=32, heads=4, mlp=64, ps=4, depth=2,
               classes=10)

    key = jax.random.PRNGKey(0)
    pkey, xkey = jax.random.split(key)
    params = init_params(pkey, cfg)
    prepped = prepare_params(params, cfg)
    x = jax.random.normal(xkey, (2, 3, cfg['image'][0], cfg['image'][1]),
                          jnp.float32)

    out = vit_forward_pallas(x, prepped, cfg)
    out = jax.block_until_ready(out)

    ref = vit_forward_ref(x, params, cfg)
    err = float(jnp.max(jnp.abs(out - ref)))
    assert out.shape == (2, cfg['classes']), out.shape
    assert err < 1e-3, f"max abs error {err}"
    print("KERNEL_OK")
</pallas_src>

<mosaic_0001>
module attributes {stable_mosaic.version = 11 : i64} {
  func.func @_patch_embed_kernel(%arg0: i32, %arg1: memref<32x48xbf16, #tpu.memory_space<vmem>>, %arg2: memref<48x32xbf16, #tpu.memory_space<vmem>>, %arg3: memref<1x32xf32, #tpu.memory_space<vmem>>, %arg4: memref<32x32xf32, #tpu.memory_space<vmem>>) attributes {dimension_semantics = [#tpu.dimension_semantics<arbitrary>], iteration_bounds = array<i64: 1>, scalar_prefetch = 0 : i64, scratch_operands = 0 : i64, tpu.core_type = #tpu.core_type<tc>, window_params = [{pipeline_mode = #tpu.pipeline_mode<synchronous>, transform_indices = @transform_0, window_bounds = array<i64: 32, 48>}, {pipeline_mode = #tpu.pipeline_mode<synchronous>, transform_indices = @transform_1, window_bounds = array<i64: 48, 32>}, {pipeline_mode = #tpu.pipeline_mode<synchronous>, transform_indices = @transform_2, window_bounds = array<i64: 1, 32>}, {pipeline_mode = #tpu.pipeline_mode<synchronous>, transform_indices = @transform_3, window_bounds = array<i64: 32, 32>}]} {
    %c0 = arith.constant 0 : index
    %c0_0 = arith.constant 0 : index
    %0 = vector.load %arg1[%c0, %c0_0] : memref<32x48xbf16, #tpu.memory_space<vmem>>, vector<32x48xbf16>
    %c0_1 = arith.constant 0 : index
    %c0_2 = arith.constant 0 : index
    %1 = vector.load %arg2[%c0_1, %c0_2] : memref<48x32xbf16, #tpu.memory_space<vmem>>, vector<48x32xbf16>
    %cst = arith.constant dense<0.000000e+00> : vector<32x32xf32>
    %2 = tpu.matmul %0, %1, %cst {dimension_numbers = #tpu.dot_dimension_numbers<[1], [0], [0], [1], [0, 0, 1, 1], [], []>} : vector<32x48xbf16>, vector<48x32xbf16>, vector<32x32xf32> -> vector<32x32xf32>
    %c0_3 = arith.constant 0 : index
    %c0_4 = arith.constant 0 : index
    %3 = vector.load %arg3[%c0_3, %c0_4] : memref<1x32xf32, #tpu.memory_space<vmem>>, vector<1x32xf32>
    %4 = vector.broadcast %3 : vector<1x32xf32> to vector<32x32xf32>
    %5 = arith.addf %2, %4 : vector<32x32xf32>
    %c0_5 = arith.constant 0 : index
    %c0_6 = arith.constant 0 : index
    %6 = vector.load %arg4[%c0_5, %c0_6] : memref<32x32xf32, #tpu.memory_space<vmem>>, vector<32x32xf32>
    tpu.vector_store %arg4[%c0_5, %c0_6], %5 {strides = array<i32>} : memref<32x32xf32, #tpu.memory_space<vmem>>, vector<32x32xf32>,
    return
  }
  func.func @transform_0(%arg0: i32) -> (i32, i32) {
    %c0_i32 = arith.constant 0 : i32
    %c0_i32_0 = arith.constant 0 : i32
    %c0_i32_1 = arith.constant 0 : i32
    return %c0_i32, %c0_i32_0 : i32, i32
  }
  func.func @transform_1(%arg0: i32) -> (i32, i32) {
    %c0_i32 = arith.constant 0 : i32
    %c0_i32_0 = arith.constant 0 : i32
    %c0_i32_1 = arith.constant 0 : i32
    return %c0_i32, %c0_i32_0 : i32, i32
  }
  func.func @transform_2(%arg0: i32) -> (i32, i32) {
    %c0_i32 = arith.constant 0 : i32
    %c0_i32_0 = arith.constant 0 : i32
    %c0_i32_1 = arith.constant 0 : i32
    return %c0_i32, %c0_i32_0 : i32, i32
  }
  func.func @transform_3(%arg0: i32) -> (i32, i32) {
    %c0_i32 = arith.constant 0 : i32
    %c0_i32_0 = arith.constant 0 : i32
    %c0_i32_1 = arith.constant 0 : i32
    return %c0_i32, %c0_i32_0 : i32, i32
  }
}

</mosaic_0001>

<bundles_post_ra>
// kernel: tpu_custom_call.1
= control target key start
LH: loop header
LB: loop body
LE: loop exit
PB: predicated region body
PF: predicated region fallthrough
CT: control target
= control target key end

     0   :  { %s215_s0 = inlined_call_operand.vmem [shape: bf16[32,48], index: 0, kind: input, shape index: {}]   ;;  %s216_s1 = inlined_call_operand.vmem [shape: bf16[48,32], index: 1, kind: input, shape index: {}]   ;;  %s217_s2 = inlined_call_operand.vmem [shape: f32[1,32], index: 2, kind: input, shape index: {}]   ;;  %s218_s3 = inlined_call_operand.hbm [shape: f32[32,32], index: 3, kind: output, shape index: {}]  }
   0x1   :  { %v133_v0 = vld [vmem:[%s216_s1 + $0x10] sm:$0xff]  ;;  %v132_v1 = vld [vmem:[%s216_s1 + $0x8] sm:$0xff] }
   0x2   :  { %70 = vmatpush.bf16.msra.mxu0 %v133_v0  ;;  %134 = vmatpush.bf16.msra.mxu1 %v133_v0 }
   0x3   :  { %8 = vsyncpa [#allocation3], 0  ;;  %v131_v2 = vld [vmem:[%s216_s1] sm:$0xff]  ;;  %v130_v4 = vld [vmem:[%s215_s0 + $0x8] sm:$0xff]  ;;  %vm58_vm0 = vcmask 392192   ;;  %vm84_vm1 = vcmask 261120  }
   0x4   :  { %v129_v3 = vld [vmem:[%s215_s0] sm:$0xff]  ;;  %s167_s1 = smov [#allocation2]   ;;  %s95_s26 = sshll.u32 %s218_s3, 4  ;;  %s96_s26 = int_to_ptr.hbm [resolvable:$true] %s95_s26 }
   0x5   :  { %v140_v5 = vld [vmem:[%s217_s2] ss:$0 sm:$0xff]  ;;  %s93_s0 = sshll.u32 %s167_s1, 4  ;;  %s168_s2 = smov 128   ;;  %s94_s0 = int_to_ptr.vmem [resolvable:$true] %s93_s0 }
   0x6   :  { %71 = vmatpush.bf16.msra.mxu0 %v132_v1  ;;  %135 = vmatpush.bf16.msra.mxu1 %v132_v1  ;;  %s169_s27 = smov 8  }
   0xa   :  { %72 = vmatpush.bf16.msra.mxu0 %v131_v2  ;;  %136 = vmatpush.bf16.msra.mxu1 %v131_v2 }
   0xd   :  { %127 = vmatmul.msk.bf16.vlgmr.msra.gmra.mxu0 %vm58_vm0, %v129_v3  ;;  %128 = vmatmul.msk.bf16.vlgmr.msra.gmra.mxu1 %vm58_vm0, %v130_v4 }
  0x8a   :  { %v74_v6 = vpop.f32.mrf.mxu0  ;;  %v79_v7 = vpop.f32.mrf.mxu1 }
  0x8b   :  { %v75_v8 = vadd.f32 %v140_v5, %v74_v6  ;;  %v80_v9 = vadd.f32 %v140_v5, %v79_v7 }
  0x8d   :  { %85 = vst.msk [vmem:[#allocation2] sm:$0xff] %vm84_vm1, %v75_v8 }
  0x8e   :  { %87 = vst.msk [vmem:[#allocation2 + $0x10] sm:$0xff] %vm84_vm1, %v80_v9 }
  0x92   :  { %v76_v10 = vpop.f32.mrf.mxu0  ;;  %v81_v11 = vpop.f32.mrf.mxu1 }
  0x93   :  { %v77_v12 = vadd.f32 %v140_v5, %v76_v10  ;;  %v82_v13 = vadd.f32 %v140_v5, %v81_v11 }
  0x95   :  { %86 = vst.msk [vmem:[#allocation2 + $0x8] sm:$0xff] %vm84_vm1, %v77_v12 }
  0x96   :  { %88 = vst.msk [vmem:[#allocation2 + $0x18] sm:$0xff] %vm84_vm1, %v82_v13 }
  0x97   :  { %101 = dma.vmem_to_hbm [thread:$0]  %s94_s0, 512, %s96_s26, [#allocation3], %s168_s2, %s168_s2, %s169_s27  }
  0x98   :  { %165 = dma.done.wait [#allocation3], 512  }
  0x99   :  { %166 = vsyncadd [#allocation3], 4294966784 }
  0x9a   :  { %106 = vsyncpa [#allocation3], 1 }

</bundles_post_ra>
